<compile_context>
chip_gen: v6e
topology: v6e:2x2x1
jax: 0.10.0
libtpu: 0.0.40
codegen_flags: <defaults>
</compile_context>

<pallas_src>
import jax
import jax.numpy as jnp
from jax.experimental import pallas as pl
from jax.experimental.pallas import tpu as pltpu


def _make_kernel(n_features):
    """Kernel over one batch tile; n_features is the TRUE (unpadded) LN width."""
    inv_n = 1.0 / float(n_features)

    def kernel(x_ref, w_emb_ref, b_emb_ref, w_h1_ref, b_h1_ref,
               w_h2_ref, b_h2_ref, ln_w_ref, ln_b_ref, w_fc_ref, out_ref):
        # token_embedding: Linear(4*vocab -> hidden)   (bf16 in, f32 accumulate)
        h = jnp.dot(x_ref[...], w_emb_ref[...],
                    preferred_element_type=jnp.float32) + b_emb_ref[...]
        # hidden[0]: Linear(hidden -> hidden//2)
        h = jnp.dot(h.astype(jnp.bfloat16), w_h1_ref[...],
                    preferred_element_type=jnp.float32) + b_h1_ref[...]
        # hidden[1]: ReLU
        h = jnp.maximum(h, 0.0)
        # hidden[2]: Linear(hidden//2 -> hidden//2)
        h = jnp.dot(h.astype(jnp.bfloat16), w_h2_ref[...],
                    preferred_element_type=jnp.float32) + b_h2_ref[...]

        # LayerNorm over the TRUE hidden//2 features (padded lanes of h are
        # exactly 0 because the weight/bias padding is zero, but we still mask
        # the centered values so mean/var use only real lanes; divisor is the
        # true feature count, eps=1e-5, biased variance, affine).
        lane = jax.lax.broadcasted_iota(jnp.int32, h.shape, 1)
        valid = lane < n_features
        mean = jnp.sum(h, axis=-1, keepdims=True) * inv_n
        centered = jnp.where(valid, h - mean, 0.0)
        var = jnp.sum(centered * centered, axis=-1, keepdims=True) * inv_n
        inv = jax.lax.rsqrt(var + 1e-5)
        hn = centered * inv * ln_w_ref[...] + ln_b_ref[...]

        # fc: Linear(hidden//2 -> vocab), no bias
        out_ref[...] = jnp.dot(hn.astype(jnp.bfloat16), w_fc_ref[...],
                               preferred_element_type=jnp.float32)

    return kernel


def _round_up(x, m):
    return ((x + m - 1) // m) * m


def _pad2(a, rows, cols):
    return jnp.pad(a, ((0, rows - a.shape[0]), (0, cols - a.shape[1])))


def mlp_forward(src, params):
    """src: [B, 4, vocab] float32. Returns [B, vocab] float32."""
    B = src.shape[0]
    vocab = src.shape[-1]
    (w_emb, b_emb, w_h1, b_h1, w_h2, b_h2, ln_w, ln_b, w_fc) = params
    K = w_emb.shape[0]    # 4 * vocab
    H = w_emb.shape[1]    # hidden
    H2 = w_h1.shape[1]    # hidden // 2

    LANE = 128
    Kp = _round_up(K, LANE)
    Hp = _round_up(H, LANE)
    H2p = _round_up(H2, LANE)
    Vp = _round_up(vocab, LANE)

    # Batch tiling: rows per grid step (multiple of 8 sublanes, capped at 128).
    bm = min(128, _round_up(B, 8))
    Bp = _round_up(B, bm)

    # Flatten and zero-pad everything to lane-dense shapes; bf16 for matmul
    # operands (halves DMA bytes, MXU-native), f32 for biases / LN params.
    x = src.reshape(B, -1)                                  # [B, 4*vocab]
    x_p = _pad2(x, Bp, Kp).astype(jnp.bfloat16)
    w_emb_p = _pad2(w_emb, Kp, Hp).astype(jnp.bfloat16)
    b_emb_p = _pad2(b_emb, 1, Hp)
    w_h1_p = _pad2(w_h1, Hp, H2p).astype(jnp.bfloat16)
    b_h1_p = _pad2(b_h1, 1, H2p)
    w_h2_p = _pad2(w_h2, H2p, H2p).astype(jnp.bfloat16)
    b_h2_p = _pad2(b_h2, 1, H2p)
    ln_w_p = _pad2(ln_w, 1, H2p)                            # zero-padded affine
    ln_b_p = _pad2(ln_b, 1, H2p)
    w_fc_p = _pad2(w_fc, H2p, Vp).astype(jnp.bfloat16)

    # Weights/biases: same full block at every grid step (kept resident).
    rep = lambda a: pl.BlockSpec(a.shape, lambda i: (0,) * a.ndim)

    out = pl.pallas_call(
        _make_kernel(H2),
        out_shape=jax.ShapeDtypeStruct((Bp, Vp), jnp.float32),
        grid=(Bp // bm,),
        in_specs=[
            pl.BlockSpec((bm, Kp), lambda i: (i, 0)),   # x: tiled over batch
            rep(w_emb_p), rep(b_emb_p),
            rep(w_h1_p), rep(b_h1_p),
            rep(w_h2_p), rep(b_h2_p),
            rep(ln_w_p), rep(ln_b_p),
            rep(w_fc_p),
        ],
        out_specs=pl.BlockSpec((bm, Vp), lambda i: (i, 0)),
        compiler_params=pltpu.CompilerParams(
            dimension_semantics=("parallel",)),
    )(x_p, w_emb_p, b_emb_p, w_h1_p, b_h1_p, w_h2_p, b_h2_p,
      ln_w_p, ln_b_p, w_fc_p)

    return out[:B, :vocab]


def init_params(key, vocab_size, hidden_size):
    """Deterministic synthetic parameters with the module's shapes.

    All linear weights are stored as [in_features, out_features] (f32).
    """
    h2 = hidden_size // 2
    keys = jax.random.split(key, 8)
    scale = 0.05
    w_emb = scale * jax.random.normal(keys[0], (4 * vocab_size, hidden_size), jnp.float32)
    b_emb = scale * jax.random.normal(keys[1], (1, hidden_size), jnp.float32)
    w_h1 = scale * jax.random.normal(keys[2], (hidden_size, h2), jnp.float32)
    b_h1 = scale * jax.random.normal(keys[3], (1, h2), jnp.float32)
    w_h2 = scale * jax.random.normal(keys[4], (h2, h2), jnp.float32)
    b_h2 = scale * jax.random.normal(keys[5], (1, h2), jnp.float32)
    ln_w = jnp.ones((1, h2), jnp.float32)    # LayerNorm weight init = 1
    ln_b = jnp.zeros((1, h2), jnp.float32)   # LayerNorm bias init = 0
    w_fc = scale * jax.random.normal(keys[6], (h2, vocab_size), jnp.float32)
    return (w_emb, b_emb, w_h1, b_h1, w_h2, b_h2, ln_w, ln_b, w_fc)


def mlp_reference(src, params):
    """Pure-JAX f32 reference for correctness check."""
    (w_emb, b_emb, w_h1, b_h1, w_h2, b_h2, ln_w, ln_b, w_fc) = params
    x = src.reshape(src.shape[0], -1)
    x = x @ w_emb + b_emb
    h = jnp.maximum(x @ w_h1 + b_h1, 0.0)
    h = h @ w_h2 + b_h2
    mean = jnp.mean(h, axis=-1, keepdims=True)
    var = jnp.mean((h - mean) ** 2, axis=-1, keepdims=True)
    h = (h - mean) * jax.lax.rsqrt(var + 1e-5) * ln_w + ln_b
    return h @ w_fc


if __name__ == "__main__":
    vocab_size = 32
    hidden_size = 32   # hidden//2 = 16
    batch = 8

    key = jax.random.PRNGKey(0)
    k_params, k_src = jax.random.split(key)
    params = init_params(k_params, vocab_size, hidden_size)
    # src: [B, 4, vocab] — 4 "tokens" per example, each a vocab-width vector.
    src = jax.random.normal(k_src, (batch, 4, vocab_size), jnp.float32)

    out = mlp_forward(src, params)
    jax.block_until_ready(out)

    ref = mlp_reference(src, params)
    assert out.shape == (batch, vocab_size)
    # bf16 matmul operands (f32 accumulate) -> relaxed but tight-enough check.
    assert jnp.allclose(out, ref, atol=2e-2, rtol=2e-2), \
        f"max abs err {jnp.max(jnp.abs(out - ref))}"
    print("KERNEL_OK")
</pallas_src>

<mosaic_0001>
module attributes {stable_mosaic.version = 11 : i64} {
  func.func @kernel(%arg0: i32, %arg1: memref<8x128xbf16, #tpu.memory_space<vmem>>, %arg2: memref<128x128xbf16, #tpu.memory_space<vmem>>, %arg3: memref<1x128xf32, #tpu.memory_space<vmem>>, %arg4: memref<128x128xbf16, #tpu.memory_space<vmem>>, %arg5: memref<1x128xf32, #tpu.memory_space<vmem>>, %arg6: memref<128x128xbf16, #tpu.memory_space<vmem>>, %arg7: memref<1x128xf32, #tpu.memory_space<vmem>>, %arg8: memref<1x128xf32, #tpu.memory_space<vmem>>, %arg9: memref<1x128xf32, #tpu.memory_space<vmem>>, %arg10: memref<128x128xbf16, #tpu.memory_space<vmem>>, %arg11: memref<8x128xf32, #tpu.memory_space<vmem>>) attributes {dimension_semantics = [#tpu.dimension_semantics<parallel>], iteration_bounds = array<i64: 1>, scalar_prefetch = 0 : i64, scratch_operands = 0 : i64, tpu.core_type = #tpu.core_type<tc>, window_params = [{transform_indices = @transform_0, window_bounds = array<i64: 8, 128>}, {pipeline_mode = #tpu.pipeline_mode<synchronous>, transform_indices = @transform_1, window_bounds = array<i64: 128, 128>}, {pipeline_mode = #tpu.pipeline_mode<synchronous>, transform_indices = @transform_2, window_bounds = array<i64: 1, 128>}, {pipeline_mode = #tpu.pipeline_mode<synchronous>, transform_indices = @transform_3, window_bounds = array<i64: 128, 128>}, {pipeline_mode = #tpu.pipeline_mode<synchronous>, transform_indices = @transform_4, window_bounds = array<i64: 1, 128>}, {pipeline_mode = #tpu.pipeline_mode<synchronous>, transform_indices = @transform_5, window_bounds = array<i64: 128, 128>}, {pipeline_mode = #tpu.pipeline_mode<synchronous>, transform_indices = @transform_6, window_bounds = array<i64: 1, 128>}, {pipeline_mode = #tpu.pipeline_mode<synchronous>, transform_indices = @transform_7, window_bounds = array<i64: 1, 128>}, {pipeline_mode = #tpu.pipeline_mode<synchronous>, transform_indices = @transform_8, window_bounds = array<i64: 1, 128>}, {pipeline_mode = #tpu.pipeline_mode<synchronous>, transform_indices = @transform_9, window_bounds = array<i64: 128, 128>}, {transform_indices = @transform_10, window_bounds = array<i64: 8, 128>}]} {
    %c0 = arith.constant 0 : index
    %c0_0 = arith.constant 0 : index
    %0 = vector.load %arg1[%c0, %c0_0] : memref<8x128xbf16, #tpu.memory_space<vmem>>, vector<8x128xbf16>
    %c0_1 = arith.constant 0 : index
    %c0_2 = arith.constant 0 : index
    %1 = vector.load %arg2[%c0_1, %c0_2] : memref<128x128xbf16, #tpu.memory_space<vmem>>, vector<128x128xbf16>
    %cst = arith.constant dense<0.000000e+00> : vector<8x128xf32>
    %2 = tpu.matmul %0, %1, %cst {dimension_numbers = #tpu.dot_dimension_numbers<[1], [0], [0], [1], [0, 0, 1, 1], [], []>} : vector<8x128xbf16>, vector<128x128xbf16>, vector<8x128xf32> -> vector<8x128xf32>
    %c0_3 = arith.constant 0 : index
    %c0_4 = arith.constant 0 : index
    %3 = vector.load %arg3[%c0_3, %c0_4] : memref<1x128xf32, #tpu.memory_space<vmem>>, vector<1x128xf32>
    %4 = vector.broadcast %3 : vector<1x128xf32> to vector<8x128xf32>
    %5 = arith.addf %2, %4 : vector<8x128xf32>
    %6 = arith.truncf %5 : vector<8x128xf32> to vector<8x128xbf16>
    %c0_5 = arith.constant 0 : index
    %c0_6 = arith.constant 0 : index
    %7 = vector.load %arg4[%c0_5, %c0_6] : memref<128x128xbf16, #tpu.memory_space<vmem>>, vector<128x128xbf16>
    %cst_7 = arith.constant dense<0.000000e+00> : vector<8x128xf32>
    %8 = tpu.matmul %6, %7, %cst_7 {dimension_numbers = #tpu.dot_dimension_numbers<[1], [0], [0], [1], [0, 0, 1, 1], [], []>} : vector<8x128xbf16>, vector<128x128xbf16>, vector<8x128xf32> -> vector<8x128xf32>
    %c0_8 = arith.constant 0 : index
    %c0_9 = arith.constant 0 : index
    %9 = vector.load %arg5[%c0_8, %c0_9] : memref<1x128xf32, #tpu.memory_space<vmem>>, vector<1x128xf32>
    %10 = vector.broadcast %9 : vector<1x128xf32> to vector<8x128xf32>
    %11 = arith.addf %8, %10 : vector<8x128xf32>
    %cst_10 = arith.constant 0.000000e+00 : f32
    %12 = vector.broadcast %cst_10 : f32 to vector<8x128xf32>
    %13 = arith.maximumf %11, %12 : vector<8x128xf32>
    %14 = arith.truncf %13 : vector<8x128xf32> to vector<8x128xbf16>
    %c0_11 = arith.constant 0 : index
    %c0_12 = arith.constant 0 : index
    %15 = vector.load %arg6[%c0_11, %c0_12] : memref<128x128xbf16, #tpu.memory_space<vmem>>, vector<128x128xbf16>
    %cst_13 = arith.constant dense<0.000000e+00> : vector<8x128xf32>
    %16 = tpu.matmul %14, %15, %cst_13 {dimension_numbers = #tpu.dot_dimension_numbers<[1], [0], [0], [1], [0, 0, 1, 1], [], []>} : vector<8x128xbf16>, vector<128x128xbf16>, vector<8x128xf32> -> vector<8x128xf32>
    %c0_14 = arith.constant 0 : index
    %c0_15 = arith.constant 0 : index
    %17 = vector.load %arg7[%c0_14, %c0_15] : memref<1x128xf32, #tpu.memory_space<vmem>>, vector<1x128xf32>
    %18 = vector.broadcast %17 : vector<1x128xf32> to vector<8x128xf32>
    %19 = arith.addf %16, %18 : vector<8x128xf32>
    %20 = tpu.iota {dimensions = array<i32: 1>} : vector<8x128xi32>
    %c16_i32 = arith.constant 16 : i32
    %21 = vector.broadcast %c16_i32 : i32 to vector<8x128xi32>
    %22 = arith.cmpi slt, %20, %21 : vector<8x128xi32>
    %cst_16 = arith.constant dense<0.000000e+00> : vector<8xf32>
    %23 = vector.multi_reduction <add>, %19, %cst_16 [1] : vector<8x128xf32> to vector<8xf32>
    %24 = vector.shape_cast %23 : vector<8xf32> to vector<8x1xf32>
    %cst_17 = arith.constant 6.250000e-02 : f32
    %25 = vector.broadcast %cst_17 : f32 to vector<8x1xf32>
    %26 = arith.mulf %24, %25 : vector<8x1xf32>
    %27 = vector.broadcast %26 : vector<8x1xf32> to vector<8x128xf32>
    %28 = arith.subf %19, %27 : vector<8x128xf32>
    %cst_18 = arith.constant 0.000000e+00 : f32
    %29 = vector.broadcast %cst_18 : f32 to vector<8x128xf32>
    %30 = arith.select %22, %28, %29 : vector<8x128xi1>, vector<8x128xf32>
    %31 = arith.mulf %30, %30 : vector<8x128xf32>
    %cst_19 = arith.constant dense<0.000000e+00> : vector<8xf32>
    %32 = vector.multi_reduction <add>, %31, %cst_19 [1] : vector<8x128xf32> to vector<8xf32>
    %33 = vector.shape_cast %32 : vector<8xf32> to vector<8x1xf32>
    %cst_20 = arith.constant 6.250000e-02 : f32
    %34 = vector.broadcast %cst_20 : f32 to vector<8x1xf32>
    %35 = arith.mulf %33, %34 : vector<8x1xf32>
    %cst_21 = arith.constant 9.99999974E-6 : f32
    %36 = vector.broadcast %cst_21 : f32 to vector<8x1xf32>
    %37 = arith.addf %35, %36 : vector<8x1xf32>
    %38 = math.rsqrt %37 : vector<8x1xf32>
    %39 = vector.broadcast %38 : vector<8x1xf32> to vector<8x128xf32>
    %40 = arith.mulf %30, %39 : vector<8x128xf32>
    %c0_22 = arith.constant 0 : index
    %c0_23 = arith.constant 0 : index
    %41 = vector.load %arg8[%c0_22, %c0_23] : memref<1x128xf32, #tpu.memory_space<vmem>>, vector<1x128xf32>
    %42 = vector.broadcast %41 : vector<1x128xf32> to vector<8x128xf32>
    %43 = arith.mulf %40, %42 : vector<8x128xf32>
    %c0_24 = arith.constant 0 : index
    %c0_25 = arith.constant 0 : index
    %44 = vector.load %arg9[%c0_24, %c0_25] : memref<1x128xf32, #tpu.memory_space<vmem>>, vector<1x128xf32>
    %45 = vector.broadcast %44 : vector<1x128xf32> to vector<8x128xf32>
    %46 = arith.addf %43, %45 : vector<8x128xf32>
    %47 = arith.truncf %46 : vector<8x128xf32> to vector<8x128xbf16>
    %c0_26 = arith.constant 0 : index
    %c0_27 = arith.constant 0 : index
    %48 = vector.load %arg10[%c0_26, %c0_27] : memref<128x128xbf16, #tpu.memory_space<vmem>>, vector<128x128xbf16>
    %cst_28 = arith.constant dense<0.000000e+00> : vector<8x128xf32>
    %49 = tpu.matmul %47, %48, %cst_28 {dimension_numbers = #tpu.dot_dimension_numbers<[1], [0], [0], [1], [0, 0, 1, 1], [], []>} : vector<8x128xbf16>, vector<128x128xbf16>, vector<8x128xf32> -> vector<8x128xf32>
    %c0_29 = arith.constant 0 : index
    %c0_30 = arith.constant 0 : index
    %50 = vector.load %arg11[%c0_29, %c0_30] : memref<8x128xf32, #tpu.memory_space<vmem>>, vector<8x128xf32>
    tpu.vector_store %arg11[%c0_29, %c0_30], %49 {strides = array<i32>} : memref<8x128xf32, #tpu.memory_space<vmem>>, vector<8x128xf32>,
    return
  }
  func.func @transform_0(%arg0: i32) -> (i32, i32) {
    %c0_i32 = arith.constant 0 : i32
    %c0_i32_0 = arith.constant 0 : i32
    return %arg0, %c0_i32 : i32, i32
  }
  func.func @transform_1(%arg0: i32) -> (i32, i32) {
    %c0_i32 = arith.constant 0 : i32
    %c0_i32_0 = arith.constant 0 : i32
    %c0_i32_1 = arith.constant 0 : i32
    return %c0_i32, %c0_i32_0 : i32, i32
  }
  func.func @transform_2(%arg0: i32) -> (i32, i32) {
    %c0_i32 = arith.constant 0 : i32
    %c0_i32_0 = arith.constant 0 : i32
    %c0_i32_1 = arith.constant 0 : i32
    return %c0_i32, %c0_i32_0 : i32, i32
  }
  func.func @transform_3(%arg0: i32) -> (i32, i32) {
    %c0_i32 = arith.constant 0 : i32
    %c0_i32_0 = arith.constant 0 : i32
    %c0_i32_1 = arith.constant 0 : i32
    return %c0_i32, %c0_i32_0 : i32, i32
  }
  func.func @transform_4(%arg0: i32) -> (i32, i32) {
    %c0_i32 = arith.constant 0 : i32
    %c0_i32_0 = arith.constant 0 : i32
    %c0_i32_1 = arith.constant 0 : i32
    return %c0_i32, %c0_i32_0 : i32, i32
  }
  func.func @transform_5(%arg0: i32) -> (i32, i32) {
    %c0_i32 = arith.constant 0 : i32
    %c0_i32_0 = arith.constant 0 : i32
    %c0_i32_1 = arith.constant 0 : i32
    return %c0_i32, %c0_i32_0 : i32, i32
  }
  func.func @transform_6(%arg0: i32) -> (i32, i32) {
    %c0_i32 = arith.constant 0 : i32
    %c0_i32_0 = arith.constant 0 : i32
    %c0_i32_1 = arith.constant 0 : i32
    return %c0_i32, %c0_i32_0 : i32, i32
  }
  func.func @transform_7(%arg0: i32) -> (i32, i32) {
    %c0_i32 = arith.constant 0 : i32
    %c0_i32_0 = arith.constant 0 : i32
    %c0_i32_1 = arith.constant 0 : i32
    return %c0_i32, %c0_i32_0 : i32, i32
  }
  func.func @transform_8(%arg0: i32) -> (i32, i32) {
    %c0_i32 = arith.constant 0 : i32
    %c0_i32_0 = arith.constant 0 : i32
    %c0_i32_1 = arith.constant 0 : i32
    return %c0_i32, %c0_i32_0 : i32, i32
  }
  func.func @transform_9(%arg0: i32) -> (i32, i32) {
    %c0_i32 = arith.constant 0 : i32
    %c0_i32_0 = arith.constant 0 : i32
    %c0_i32_1 = arith.constant 0 : i32
    return %c0_i32, %c0_i32_0 : i32, i32
  }
  func.func @transform_10(%arg0: i32) -> (i32, i32) {
    %c0_i32 = arith.constant 0 : i32
    %c0_i32_0 = arith.constant 0 : i32
    return %arg0, %c0_i32 : i32, i32
  }
}

</mosaic_0001>

<bundles_post_ra>
// kernel: tpu_custom_call.1
= control target key start
LH: loop header
LB: loop body
LE: loop exit
PB: predicated region body
PF: predicated region fallthrough
CT: control target
= control target key end

     0   :  { %15 = vsyncpa [#allocation3], 0  ;;  %s1069_s0 = inlined_call_operand.hbm [shape: bf16[8,128], index: 0, kind: input, shape index: {}]   ;;  %s1070_s1 = inlined_call_operand.hbm [shape: bf16[128,128], index: 1, kind: input, shape index: {}]   ;;  %s1071_s2 = inlined_call_operand.vmem [shape: f32[1,128], index: 2, kind: input, shape index: {}]   ;;  %s1072_s3 = inlined_call_operand.hbm [shape: bf16[128,128], index: 3, kind: input, shape index: {}]   ;;  %s1073_s4 = inlined_call_operand.vmem [shape: f32[1,128], index: 4, kind: input, shape index: {}]   ;;  %s1074_s5 = inlined_call_operand.hbm [shape: bf16[128,128], index: 5, kind: input, shape index: {}]   ;;  %s1075_s6 = inlined_call_operand.vmem [shape: f32[1,128], index: 6, kind: input, shape index: {}]   ;;  %s1076_s7 = inlined_call_operand.vmem [shape: f32[1,128], index: 7, kind: input, shape index: {}]   ;;  %s1077_s8 = inlined_call_operand.vmem [shape: f32[1,128], index: 8, kind: input, shape index: {}]   ;;  %s1078_s9 = inlined_call_operand.hbm [shape: bf16[128,128], index: 9, kind: input, shape index: {}]   ;;  %s1079_s10 = inlined_call_operand.hbm [shape: f32[8,128], index: 10, kind: output, shape index: {}]  }
   0x1   :  { %16 = vsyncpa [#allocation6], 0 }
   0x2   :  { %17 = vsyncpa [#allocation9], 0 }
   0x3   :  { %18 = vsyncpa [#allocation4], 0  ;;  %s919_s13 = smov [#allocation5]  }
   0x4   :  { %s34_s14 = sshll.u32 %s919_s13, 4  ;;  %s35_s14 = int_to_ptr.vmem [resolvable:$true] %s34_s14 }
   0x5   :  { %s799_s15 = scalar_lea.vmem %s35_s14, 1024  ;;  %p804_p1 = scmp.lt.s32.totalorder %s35_s14, %s35_s14 }
   0x6   :  { %p800_p0 = scmp.ne.s32.totalorder %s35_s14, %s799_s15  ;;  %p805_p2 = scmp.lt.s32.totalorder %s799_s15, %s799_s15 }
   0x8   :  { %p806_p3 = por %p805_p2, %p804_p1 }
   0xa   :  { %p807_p4 = pnand %p806_p3, %p800_p0 }
   0xc   :  { %810 = shalt.err (!%p807_p4)
}
   0xd   :  { %s920_s16 = smov 64   ;;  %s921_s17 = smov 4  }
   0xe   :  { %40 = dma.hbm_to_vmem [thread:$0]  %s1070_s1, 1024, %s35_s14, [#allocation6], %s920_s16, %s920_s16, %s921_s17  }
   0xf   :  { %s922_s20 = smov [#allocation8]   ;;  %s923_s22 = smov [#allocation2]  }
  0x10   :  { %s62_s21 = sshll.u32 %s922_s20, 4  ;;  %s25_s23 = sshll.u32 %s923_s22, 4  ;;  %s63_s21 = int_to_ptr.vmem [resolvable:$true] %s62_s21  ;;  %s26_s23 = int_to_ptr.vmem [resolvable:$true] %s25_s23 }
  0x11   :  { %s819_s24 = scalar_lea.vmem %s63_s21, 1024  ;;  %p824_p6 = scmp.lt.s32.totalorder %s63_s21, %s63_s21 }
  0x12   :  { %p820_p5 = scmp.ne.s32.totalorder %s63_s21, %s819_s24  ;;  %p825_p7 = scmp.lt.s32.totalorder %s819_s24, %s819_s24 }
  0x14   :  { %p826_p8 = por %p825_p7, %p824_p6 }
  0x16   :  { %p827_p9 = pnand %p826_p8, %p820_p5 }
  0x18   :  { %830 = shalt.err (!%p827_p9)
}
  0x19   :  { %68 = dma.hbm_to_vmem [thread:$0]  %s1074_s5, 1024, %s63_s21, [#allocation9], %s920_s16, %s920_s16, %s921_s17  }
  0x1a   :  { %s839_s1 = scalar_lea.vmem %s26_s23, 64  ;;  %p844_p11 = scmp.lt.s32.totalorder %s26_s23, %s26_s23 }
  0x1b   :  { %p840_p10 = scmp.ne.s32.totalorder %s26_s23, %s839_s1  ;;  %p845_p12 = scmp.lt.s32.totalorder %s839_s1, %s839_s1 }
  0x1d   :  { %p846_p13 = por %p845_p12, %p844_p11 }
  0x1f   :  { %p847_p0 = pnand %p846_p13, %p840_p10 }
  0x21   :  { %850 = shalt.err (!%p847_p0)
}
  0x22   :  { %28 = dma.hbm_to_vmem [thread:$0]  %s1069_s0, 64, %s26_s23, [#allocation3]  }
  0x23   :  { %s924_s29 = smov [#allocation7]   ;;  %s925_s11 = smov [#allocation10]  }
  0x24   :  { %s48_s30 = sshll.u32 %s924_s29, 4  ;;  %s80_s12 = sshll.u32 %s925_s11, 4  ;;  %s49_s30 = int_to_ptr.vmem [resolvable:$true] %s48_s30  ;;  %s81_s12 = int_to_ptr.vmem [resolvable:$true] %s80_s12 }
  0x25   :  { %s859_s13 = scalar_lea.vmem %s49_s30, 1024  ;;  %p864_p2 = scmp.lt.s32.totalorder %s49_s30, %s49_s30 }
  0x26   :  { %p860_p1 = scmp.ne.s32.totalorder %s49_s30, %s859_s13  ;;  %p865_p3 = scmp.lt.s32.totalorder %s859_s13, %s859_s13 }
  0x28   :  { %p866_p4 = por %p865_p3, %p864_p2 }
  0x2a   :  { %p867_p5 = pnand %p866_p4, %p860_p1 }
  0x2c   :  { %870 = shalt.err (!%p867_p5)
}
  0x2d   :  { %54 = dma.hbm_to_vmem [thread:$0]  %s1072_s3, 1024, %s49_s30, [#allocation6], %s920_s16, %s920_s16, %s921_s17  }
  0x2e   :  { %s879_s0 = scalar_lea.vmem %s81_s12, 1024  ;;  %p884_p7 = scmp.lt.s32.totalorder %s81_s12, %s81_s12 }
  0x2f   :  { %p880_p6 = scmp.ne.s32.totalorder %s81_s12, %s879_s0  ;;  %p885_p8 = scmp.lt.s32.totalorder %s879_s0, %s879_s0 }
  0x31   :  { %p886_p9 = por %p885_p8, %p884_p7 }
  0x33   :  { %p887_p10 = pnand %p886_p9, %p880_p6 }
  0x35   :  { %890 = shalt.err (!%p887_p10)
}
  0x36   :  { %86 = dma.hbm_to_vmem [thread:$0]  %s1078_s9, 1024, %s81_s12, [#allocation9], %s920_s16, %s920_s16, %s921_s17  }
  0x37   :  { %911 = dma.done.wait [#allocation3], 64  }
  0x38   :  { %912 = vsyncadd [#allocation3], 4294967232 }
  0x39   :  { %913 = dma.done.wait [#allocation6], 2048  }
  0x3a   :  { %914 = vsyncadd [#allocation6], 4294965248 }
  0x3b   :  { %915 = dma.done.wait [#allocation9], 2048  }
  0x3c   :  { %916 = vsyncadd [#allocation9], 4294965248  ;;  %v926_v0 = vmov 0.0   ;;  %vm927_vm0 = vmmov 0   ;;  %v757_v1 = vld [vmem:[#allocation5 + $0x38] sm:$0xff]   ;;  %v758_v2 = vld [vmem:[#allocation5 + $0x30] sm:$0xff]   ;;  %v440_v49 = vlaneseq }
  0x3d   :  { %667 = vmatprep.subr.bf16.mxu0 %v926_v0  ;;  %683 = vmatprep.mubr.msk.bf16.mxu0 %vm927_vm0, %v926_v0  ;;  %v759_v3 = vld [vmem:[#allocation5 + $0x28] sm:$0xff]   ;;  %v765_v4 = vld [vmem:[#allocation7 + $0x38] sm:$0xff]   ;;  %v760_v5 = vld [vmem:[#allocation5 + $0x20] sm:$0xff]   ;;  %s928_s22 = smov [#allocation11]  }
  0x3e   :  { %687 = vmatprep.subr.bf16.mxu1 %v926_v0  ;;  %703 = vmatprep.mubr.msk.bf16.mxu1 %vm927_vm0, %v926_v0  ;;  %v766_v6 = vld [vmem:[#allocation7 + $0x30] sm:$0xff]   ;;  %v761_v7 = vld [vmem:[#allocation5 + $0x18] sm:$0xff]   ;;  %v767_v8 = vld [vmem:[#allocation7 + $0x28] sm:$0xff]   ;;  %v441_v50 = vand.u32 127, %v440_v49  ;;  %s583_s23 = sshll.u32 %s928_s22, 4  ;;  %s584_s23 = int_to_ptr.vmem [resolvable:$true] %s583_s23 }
  0x3f   :  { %668 = vmatpush3.bf16.msra.mxu0 %v757_v1  ;;  %688 = vmatpush3.bf16.msra.mxu1 %v765_v4  ;;  %v762_v9 = vld [vmem:[#allocation5 + $0x10] sm:$0xff]   ;;  %v768_v10 = vld [vmem:[#allocation7 + $0x20] sm:$0xff]   ;;  %v763_v11 = vld [vmem:[#allocation5 + $0x8] sm:$0xff]   ;;  %s891_s24 = scalar_lea.vmem %s584_s23, 128  ;;  %p896_p12 = scmp.lt.s32.totalorder %s584_s23, %s584_s23 }
  0x40   :  { %669 = vmatprep.subr.bf16.mxu0 %v926_v0  ;;  %689 = vmatprep.subr.bf16.mxu1 %v926_v0  ;;  %v769_v12 = vld [vmem:[#allocation7 + $0x18] sm:$0xff]   ;;  %v764_v13 = vld [vmem:[#allocation5] sm:$0xff]   ;;  %v770_v14 = vld [vmem:[#allocation7 + $0x10] sm:$0xff]   ;;  %vm442_vm1 = vcmp.lt.s32.totalorder %v441_v50, 16  ;;  %p892_p11 = scmp.ne.s32.totalorder %s584_s23, %s891_s24  ;;  %p897_p13 = scmp.lt.s32.totalorder %s891_s24, %s891_s24 }
  0x41   :  { %v103_v15 = vld [vmem:[#allocation2] sm:$0xf]  ;;  %v771_v16 = vld [vmem:[#allocation7 + $0x8] sm:$0xff]   ;;  %v772_v17 = vld [vmem:[#allocation7] sm:$0xff]  }
  0x42   :  { %v773_v18 = vld [vmem:[#allocation8 + $0x38] sm:$0xff]   ;;  %v774_v19 = vld [vmem:[#allocation8 + $0x30] sm:$0xff]   ;;  %v775_v20 = vld [vmem:[#allocation8 + $0x28] sm:$0xff]   ;;  %p898_p0 = por %p897_p13, %p896_p12 }
  0x43   :  { %670 = vmatpush3.bf16.msra.mxu0 %v758_v2  ;;  %690 = vmatpush3.bf16.msra.mxu1 %v766_v6  ;;  %v776_v21 = vld [vmem:[#allocation8 + $0x20] sm:$0xff]   ;;  %v777_v22 = vld [vmem:[#allocation8 + $0x18] sm:$0xff]   ;;  %v778_v23 = vld [vmem:[#allocation8 + $0x10] sm:$0xff]  }
  0x44   :  { %671 = vmatprep.subr.bf16.mxu0 %v926_v0  ;;  %691 = vmatprep.subr.bf16.mxu1 %v926_v0  ;;  %v594_v24 = vld [vmem:[%s1071_s2] ss:$0 sm:$0xff]  ;;  %v779_v31 = vld [vmem:[#allocation8 + $0x8] sm:$0xff]   ;;  %v780_v32 = vld [vmem:[#allocation8] sm:$0xff]   ;;  %p899_p1 = pnand %p898_p0, %p892_p11 }
  0x45   :  { %v603_v33 = vld [vmem:[%s1073_s4] ss:$0 sm:$0xff]  ;;  %v782_v48 = vld [vmem:[#allocation10 + $0x30] sm:$0xff]   ;;  %v783_v56 = vld [vmem:[#allocation10 + $0x28] sm:$0xff]  }
  0x46   :  { %v612_v41 = vld [vmem:[%s1075_s6] ss:$0 sm:$0xff]  ;;  %v784_v57 = vld [vmem:[#allocation10 + $0x20] sm:$0xff]   ;;  %v786_v59 = vld [vmem:[#allocation10 + $0x10] sm:$0xff]  }
  0x47   :  { %672 = vmatpush3.bf16.msra.mxu0 %v759_v3  ;;  %692 = vmatpush3.bf16.msra.mxu1 %v767_v8  ;;  %v781_v47 = vld [vmem:[#allocation10 + $0x38] sm:$0xff]   ;;  %v787_v60 = vld [vmem:[#allocation10 + $0x8] sm:$0xff]   ;;  %v788_v61 = vld [vmem:[#allocation10] sm:$0xff]  }
  0x48   :  { %673 = vmatprep.subr.bf16.mxu0 %v926_v0  ;;  %693 = vmatprep.subr.bf16.mxu1 %v926_v0  ;;  %v785_v58 = vld [vmem:[#allocation10 + $0x18] sm:$0xff]  }
  0x49   :  { %v621_v3 = vld [vmem:[%s1076_s7] ss:$0 sm:$0xff] }
  0x4b   :  { %674 = vmatpush3.bf16.msra.mxu0 %v760_v5  ;;  %694 = vmatpush3.bf16.msra.mxu1 %v768_v10  ;;  %v622_v5 = vld [vmem:[%s1077_s8] ss:$0 sm:$0xff] }
  0x4c   :  { %675 = vmatprep.subr.bf16.mxu0 %v926_v0  ;;  %695 = vmatprep.subr.bf16.mxu1 %v926_v0 }
  0x4f   :  { %676 = vmatpush3.bf16.msra.mxu0 %v761_v7  ;;  %696 = vmatpush3.bf16.msra.mxu1 %v769_v12 }
  0x50   :  { %677 = vmatprep.subr.bf16.mxu0 %v926_v0  ;;  %697 = vmatprep.subr.bf16.mxu1 %v926_v0 }
  0x53   :  { %678 = vmatpush3.bf16.msra.mxu0 %v762_v9  ;;  %698 = vmatpush3.bf16.msra.mxu1 %v770_v14 }
  0x54   :  { %679 = vmatprep.subr.bf16.mxu0 %v926_v0  ;;  %699 = vmatprep.subr.bf16.mxu1 %v926_v0 }
  0x57   :  { %680 = vmatpush3.bf16.msra.mxu0 %v763_v11  ;;  %700 = vmatpush3.bf16.msra.mxu1 %v771_v16 }
  0x58   :  { %681 = vmatprep.subr.bf16.mxu0 %v926_v0  ;;  %701 = vmatprep.subr.bf16.mxu1 %v926_v0 }
  0x5b   :  { %682 = vmatpush3.bf16.msra.mxu0 %v764_v13  ;;  %702 = vmatpush3.bf16.msra.mxu1 %v772_v17 }
  0x5c   :  { %707 = vmatprep.subr.bf16.mxu0 %v926_v0  ;;  %727 = vmatprep.subr.bf16.mxu1 %v926_v0 }
  0x5e   :  { %684 = vmatmul.mubr.bf16.vlgmr.msra.gmra.mxu0 %v103_v15 }
  0x5f   :  { %723 = vmatprep.mubr.msk.bf16.mxu0 %vm927_vm0, %v926_v0  ;;  %708 = vmatpush3.bf16.msra.mxu0 %v773_v18 }
  0x60   :  { %709 = vmatprep.subr.bf16.mxu0 %v926_v0 }
  0x63   :  { %710 = vmatpush3.bf16.msra.mxu0 %v774_v19 }
  0x64   :  { %711 = vmatprep.subr.bf16.mxu0 %v926_v0 }
  0x67   :  { %712 = vmatpush3.bf16.msra.mxu0 %v775_v20 }
  0x68   :  { %713 = vmatprep.subr.bf16.mxu0 %v926_v0 }
  0x6b   :  { %714 = vmatpush3.bf16.msra.mxu0 %v776_v21 }
  0x6c   :  { %715 = vmatprep.subr.bf16.mxu0 %v926_v0 }
  0x6f   :  { %716 = vmatpush3.bf16.msra.mxu0 %v777_v22 }
  0x70   :  { %717 = vmatprep.subr.bf16.mxu0 %v926_v0 }
  0x73   :  { %718 = vmatpush3.bf16.msra.mxu0 %v778_v23 }
  0x74   :  { %719 = vmatprep.subr.bf16.mxu0 %v926_v0 }
  0x77   :  { %720 = vmatpush3.bf16.msra.mxu0 %v779_v31 }
  0x78   :  { %721 = vmatprep.subr.bf16.mxu0 %v926_v0 }
  0x7b   :  { %722 = vmatpush3.bf16.msra.mxu0 %v780_v32 }
 0x11e   :  { %v209_v25 = vpop.f32.mrf.mxu0 }
 0x11f   :  { %v210_v26 = vadd.f32 %v594_v24, %v209_v25 }
 0x120   :  { %v685_v27 = vpop.f32.mrf.mxu0 }
 0x121   :  { %v215_v28 = vpack.c.bf16 %v210_v26, %v210_v26 }
 0x122   :  { %v212_v29 = vpop.f32.mrf.mxu0 }
 0x123   :  { %704 = vmatmul.mubr.bf16.vlgmr.msra.gmra.mxu1 %v215_v28 }
 0x124   :  { %v686_v30 = vpop.f32.mrf.mxu0  ;;  %743 = vmatprep.mubr.msk.bf16.mxu1 %vm927_vm0, %v926_v0  ;;  %728 = vmatpush3.bf16.msra.mxu1 %v781_v47 }
 0x125   :  { %729 = vmatprep.subr.bf16.mxu1 %v926_v0 }
 0x128   :  { %730 = vmatpush3.bf16.msra.mxu1 %v782_v48 }
 0x129   :  { %731 = vmatprep.subr.bf16.mxu1 %v926_v0 }
 0x12c   :  { %732 = vmatpush3.bf16.msra.mxu1 %v783_v56 }
 0x12d   :  { %733 = vmatprep.subr.bf16.mxu1 %v926_v0 }
 0x130   :  { %734 = vmatpush3.bf16.msra.mxu1 %v784_v57 }
 0x131   :  { %735 = vmatprep.subr.bf16.mxu1 %v926_v0 }
 0x134   :  { %736 = vmatpush3.bf16.msra.mxu1 %v785_v58 }
 0x135   :  { %737 = vmatprep.subr.bf16.mxu1 %v926_v0 }
 0x138   :  { %738 = vmatpush3.bf16.msra.mxu1 %v786_v59 }
 0x139   :  { %739 = vmatprep.subr.bf16.mxu1 %v926_v0 }
 0x13c   :  { %740 = vmatpush3.bf16.msra.mxu1 %v787_v60 }
 0x13d   :  { %741 = vmatprep.subr.bf16.mxu1 %v926_v0 }
 0x140   :  { %742 = vmatpush3.bf16.msra.mxu1 %v788_v61 }
 0x1e3   :  { %v321_v34 = vpop.f32.mrf.mxu1 }
 0x1e4   :  { %v322_v35 = vadd.f32 %v603_v33, %v321_v34 }
 0x1e5   :  { %v705_v36 = vpop.f32.mrf.mxu1 }
 0x1e6   :  { %v327_v37 = vmax.f32 %v322_v35, 0.0 }
 0x1e7   :  { %v324_v38 = vpop.f32.mrf.mxu1 }
 0x1e8   :  { %v328_v39 = vpack.c.bf16 %v327_v37, %v327_v37 }
 0x1e9   :  { %v706_v40 = vpop.f32.mrf.mxu1 }
 0x1ea   :  { %724 = vmatmul.mubr.bf16.vlgmr.msra.gmra.mxu0 %v328_v39 }
 0x2aa   :  { %v434_v42 = vpop.f32.mrf.mxu0 }
 0x2ab   :  { %v435_v43 = vadd.f32 %v612_v41, %v434_v42 }
 0x2ac   :  { %v725_v44 = vpop.f32.mrf.mxu0 }
 0x2ad   :  { %443 = vadd.xlane.f32.xlu0 %v435_v43 }
 0x2ae   :  { %v437_v45 = vpop.f32.mrf.mxu0 }
 0x2b0   :  { %v726_v46 = vpop.f32.mrf.mxu0 }
 0x336   :  { %v444_v51 = vpop.xlane.xlu0 %443 }
 0x337   :  { %v445_v52 = vmul.f32 0.0625, %v444_v51 }
 0x339   :  { %v446_v53 = vsub.f32 %v435_v43, %v445_v52 }
 0x33b   :  { %v447_v54 = vsel %vm442_vm1, %v446_v53, 0.0 }
 0x33c   :  { %v448_v55 = vmul.f32 %v447_v54, %v447_v54 }
 0x33e   :  { %449 = vadd.xlane.f32.xlu0 %v448_v55 }
 0x3c7   :  { %v450_v62 = vpop.xlane.xlu0 %449 }
 0x3c8   :  { %v451_v63 = vmul.f32 0.0625, %v450_v62 }
 0x3ca   :  { %v452_v1 = vadd.f32 1e-05, %v451_v63 }
 0x3cc   :  { %789 = vrsqrt.f32 %v452_v1 }
 0x3d9   :  { %v790_v2 = vpop.eup %789 }
 0x3da   :  { %v454_v4 = vmul.f32 %v790_v2, %v447_v54 }
 0x3dc   :  { %v462_v6 = vmul.f32 %v621_v3, %v454_v4 }
 0x3de   :  { %v470_v7 = vadd.f32 %v622_v5, %v462_v6 }
 0x3e0   :  { %v471_v8 = vpack.c.bf16 %v470_v7, %v470_v7 }
 0x3e2   :  { %744 = vmatmul.mubr.bf16.vlgmr.msra.gmra.mxu1 %v471_v8 }
 0x4a2   :  { %v570_v0 = vpop.f32.mrf.mxu1 }
 0x4a3   :  { %576 = vst [vmem:[#allocation11] sm:$0xff] %v570_v0 }
 0x4a4   :  { %v745_v9 = vpop.f32.mrf.mxu1 }
 0x4a5   :  { %902 = shalt.err (!%p899_p1)
}
 0x4a6   :  { %586 = dma.vmem_to_hbm [thread:$0]  %s584_s23, 128, %s1079_s10, [#allocation4]   ;;  %v573_v10 = vpop.f32.mrf.mxu1 }
 0x4a8   :  { %v746_v11 = vpop.f32.mrf.mxu1 }
 0x4a9   :  { %917 = dma.done.wait [#allocation4], 128  }
 0x4aa   :  { %918 = vsyncadd [#allocation4], 4294967168 }
 0x4ab   :  { %590 = vsyncpa [#allocation3], 1 }
 0x4ac   :  { %591 = vsyncpa [#allocation6], 1 }
 0x4ad   :  { %592 = vsyncpa [#allocation9], 1 }
 0x4ae   :  { %593 = vsyncpa [#allocation4], 1 }

</bundles_post_ra>
